<compile_context>
chip_gen: v5e
topology: v5e:2x2
jax: 0.10.0
libtpu: 0.0.40
codegen_flags: <defaults>
</compile_context>

<pallas_src>
import jax
import jax.numpy as jnp
from jax.experimental import pallas as pl
from jax.experimental.pallas import tpu as pltpu


def _round_up(v, m):
    return ((v + m - 1) // m) * m


# ---------------------------------------------------------------------------
# Kernels
# ---------------------------------------------------------------------------
def asl_fused_kernel(x_ref, w_ref, b_ref, o_ref):
    # Folded affine map: [TB, F_pad] @ [F_pad, n_pad] + [1, n_pad]
    acc = jnp.dot(x_ref[...], w_ref[...], preferred_element_type=jnp.float32)
    o_ref[...] = (acc + b_ref[...]).astype(o_ref.dtype)


def asl_mlp_kernel(x_ref, w0_ref, b0_ref, w1_ref, b1_ref, w2_ref, b2_ref, o_ref):
    # Unfused 3-layer path (kept for a future training/dropout mode).
    h0 = jnp.dot(x_ref[...], w0_ref[...],
                 preferred_element_type=jnp.float32) + b0_ref[...]
    # dropout (eval mode) -> identity
    h1 = jnp.dot(h0.astype(w1_ref.dtype), w1_ref[...],
                 preferred_element_type=jnp.float32) + b1_ref[...]
    out = jnp.dot(h1.astype(w2_ref.dtype), w2_ref[...],
                  preferred_element_type=jnp.float32) + b2_ref[...]
    o_ref[...] = out.astype(o_ref.dtype)


# ---------------------------------------------------------------------------
# Wrapper helpers
# ---------------------------------------------------------------------------
def _vmem_cap_bytes():
    """Generation-aware VMEM ceiling: 3/4 of physical VMEM per TensorCore."""
    phys = 64 << 20  # conservative default (v7x has the smallest per-TC VMEM)
    try:
        phys = int(getattr(pltpu.get_tpu_info(), "vmem_capacity_bytes", phys))
    except Exception:
        pass
    return (phys * 3) // 4


def _choose_batch_tile(B, block_b):
    """TB minimizing batch padding; >=2 tiles for large B (v7x megacore balance)."""
    num_tiles = max(-(-B // block_b), 1)
    if num_tiles == 1 and B >= 256:
        num_tiles = 2
    tb = _round_up(-(-B // num_tiles), 16)   # 16: bf16 sublane packing of x tile
    b_pad = _round_up(B, tb)
    return tb, b_pad


# ---------------------------------------------------------------------------
# Forward
# ---------------------------------------------------------------------------
def asl_model_forward(x, params, *, fold=True, block_b=1024,
                      compute_dtype=jnp.bfloat16, out_dtype=jnp.float32,
                      training=False, dropout_p=0.0):
    """x: [B, in_features] float32. params: dict of w0,b0,w1,b1,w2,b2 (f32)."""
    if training and dropout_p > 0.0:
        # TODO(synk): training-mode dropout not implemented; eval-mode forward only.
        raise NotImplementedError("training-mode dropout is not implemented")

    w0, b0, w1, b1, w2, b2 = (params["w0"], params["b0"], params["w1"],
                              params["b1"], params["w2"], params["b2"])
    B, F = x.shape
    n_class = w2.shape[1]

    # Lane padding: K dim (F) and class dim to multiples of 128 (lane-dense).
    f_pad = _round_up(max(F, 128), 128)
    n_pad = _round_up(max(n_class, 128), 128)

    # Batch tiling.
    TB, B_pad = _choose_batch_tile(B, block_b)
    grid = (B_pad // TB,)

    if B_pad != B or f_pad != F:
        x = jnp.pad(x, ((0, B_pad - B), (0, f_pad - F)))
    xk = x.astype(compute_dtype)

    w_bytes = jnp.dtype(compute_dtype).itemsize
    o_bytes = jnp.dtype(out_dtype).itemsize
    cap = _vmem_cap_bytes()

    resident = lambda shape: pl.BlockSpec(shape, lambda i: tuple(0 for _ in shape))

    if fold:
        # Fold the whole network in f32 (before any bf16 cast).
        hp = jax.lax.Precision.HIGHEST
        W = jnp.dot(jnp.dot(w0, w1, precision=hp), w2, precision=hp)
        bvec = jnp.dot(jnp.dot(b0, w1, precision=hp) + b1, w2, precision=hp) + b2
        W = jnp.pad(W, ((0, f_pad - F), (0, n_pad - n_class))).astype(compute_dtype)
        bvec = jnp.pad(bvec, ((0, 0), (0, n_pad - n_class))).astype(jnp.float32)

        need = (2 * (f_pad * n_pad * w_bytes + n_pad * 4)
                + 2 * (TB * f_pad * w_bytes + TB * n_pad * o_bytes))
        vmem_bytes = int(min(max(2 * need + (4 << 20), 16 << 20), cap))

        out = pl.pallas_call(
            asl_fused_kernel,
            out_shape=jax.ShapeDtypeStruct((B_pad, n_pad), out_dtype),
            grid=grid,
            in_specs=[
                pl.BlockSpec((TB, f_pad), lambda i: (i, 0)),   # x: tiled over batch
                resident((f_pad, n_pad)),                      # folded W: VMEM-resident
                resident((1, n_pad)),                          # folded bias
            ],
            out_specs=pl.BlockSpec((TB, n_pad), lambda i: (i, 0)),
            compiler_params=pltpu.CompilerParams(
                dimension_semantics=("parallel",),
                vmem_limit_bytes=vmem_bytes,
            ),
        )(xk, W, bvec)
        return out[:B, :n_class]

    # fold=False: 3-dot kernel with VMEM-resident per-layer weights.
    w0p = jnp.pad(w0, ((0, f_pad - F), (0, 0))).astype(compute_dtype)
    w1k = w1.astype(compute_dtype)
    w2p = jnp.pad(w2, ((0, 0), (0, n_pad - n_class))).astype(compute_dtype)
    b0k = b0.astype(jnp.float32)
    b1k = b1.astype(jnp.float32)
    b2p = jnp.pad(b2, ((0, 0), (0, n_pad - n_class))).astype(jnp.float32)

    need = (2 * (f_pad * 1024 + 1024 * 512 + 512 * n_pad) * w_bytes
            + 2 * (1024 + 512 + n_pad) * 4
            + 2 * (TB * f_pad * w_bytes + TB * n_pad * o_bytes)
            + TB * (1024 + 512) * 4)
    vmem_bytes = int(min(max(2 * need + (4 << 20), 16 << 20), cap))

    out = pl.pallas_call(
        asl_mlp_kernel,
        out_shape=jax.ShapeDtypeStruct((B_pad, n_pad), out_dtype),
        grid=grid,
        in_specs=[
            pl.BlockSpec((TB, f_pad), lambda i: (i, 0)),
            resident((f_pad, 1024)), resident((1, 1024)),
            resident((1024, 512)), resident((1, 512)),
            resident((512, n_pad)), resident((1, n_pad)),
        ],
        out_specs=pl.BlockSpec((TB, n_pad), lambda i: (i, 0)),
        compiler_params=pltpu.CompilerParams(
            dimension_semantics=("parallel",),
            vmem_limit_bytes=vmem_bytes,
        ),
    )(xk, w0p, b0k, w1k, b1k, w2p, b2p)
    return out[:B, :n_class]


# ---------------------------------------------------------------------------
# References
# ---------------------------------------------------------------------------
def reference_forward_f32(x, params):
    """True (f32, eval-mode dropout) forward of the PyTorch module."""
    hp = jax.lax.Precision.HIGHEST
    h0 = jnp.dot(x, params["w0"], precision=hp) + params["b0"]
    h1 = jnp.dot(h0, params["w1"], precision=hp) + params["b1"]
    return jnp.dot(h1, params["w2"], precision=hp) + params["b2"]


def reference_forward_bf16_fused(x, params, compute_dtype=jnp.bfloat16):
    """Mirror of the fold=True kernel dtype path (f32 fold, one bf16 dot, f32 acc)."""
    hp = jax.lax.Precision.HIGHEST
    W = jnp.dot(jnp.dot(params["w0"], params["w1"], precision=hp),
                params["w2"], precision=hp)
    b = jnp.dot(jnp.dot(params["b0"], params["w1"], precision=hp) + params["b1"],
                params["w2"], precision=hp) + params["b2"]
    return jnp.dot(x.astype(compute_dtype), W.astype(compute_dtype),
                   preferred_element_type=jnp.float32) + b


def reference_forward_bf16_unfused(x, params, compute_dtype=jnp.bfloat16):
    """Mirror of the fold=False kernel dtype path."""
    w0 = params["w0"].astype(compute_dtype)
    w1 = params["w1"].astype(compute_dtype)
    w2 = params["w2"].astype(compute_dtype)
    h0 = jnp.dot(x.astype(compute_dtype), w0,
                 preferred_element_type=jnp.float32) + params["b0"]
    h1 = jnp.dot(h0.astype(compute_dtype), w1,
                 preferred_element_type=jnp.float32) + params["b1"]
    return jnp.dot(h1.astype(compute_dtype), w2,
                   preferred_element_type=jnp.float32) + params["b2"]


def init_params(key, in_features, n_class):
    """Deterministic init emulating PyTorch Linear's U(-1/sqrt(fan_in), 1/sqrt(fan_in))."""
    ks = jax.random.split(key, 6)

    def linear(kw, kb, fan_in, fan_out):
        bound = 1.0 / jnp.sqrt(jnp.float32(fan_in))
        w = jax.random.uniform(kw, (fan_in, fan_out), jnp.float32, -bound, bound)
        b = jax.random.uniform(kb, (1, fan_out), jnp.float32, -bound, bound)
        return w, b

    w0, b0 = linear(ks[0], ks[1], in_features, 1024)
    w1, b1 = linear(ks[2], ks[3], 1024, 512)
    w2, b2 = linear(ks[4], ks[5], 512, n_class)
    return {"w0": w0, "b0": b0, "w1": w1, "b1": b1, "w2": w2, "b2": b2}


if __name__ == "__main__":
    key = jax.random.PRNGKey(0)
    k_x, k_p, k_x2, k_p2 = jax.random.split(key, 4)

    # Case 1: small shapes consistent with the module.
    B, in_features, n_class = 8, 32, 16
    x = jax.random.normal(k_x, (B, in_features), jnp.float32)
    params = init_params(k_p, in_features, n_class)
    ref32 = reference_forward_f32(x, params)

    # Fused (default) path.
    out = jax.block_until_ready(asl_model_forward(x, params))
    assert out.shape == (B, n_class)
    assert jnp.allclose(out, reference_forward_bf16_fused(x, params), atol=1e-2, rtol=1e-2)
    assert jnp.allclose(out, ref32, atol=3e-2, rtol=3e-2)

    # Unfused 3-dot path (training-mode scaffold).
    out_u = jax.block_until_ready(asl_model_forward(x, params, fold=False))
    assert out_u.shape == (B, n_class)
    assert jnp.allclose(out_u, reference_forward_bf16_unfused(x, params), atol=1e-2, rtol=1e-2)

    # bf16 output option (halved output HBM traffic).
    out_bf16 = jax.block_until_ready(asl_model_forward(x, params, out_dtype=jnp.bfloat16))
    assert out_bf16.dtype == jnp.bfloat16
    assert jnp.allclose(out_bf16.astype(jnp.float32), ref32, atol=3e-2, rtol=3e-2)

    # Case 2: exercises multi-tile grid (split to 2 tiles), batch padding (300 -> 320)
    # and F / n_class lane padding (96 -> 128, 10 -> 128).
    B2, F2, C2 = 300, 96, 10
    x2 = jax.random.normal(k_x2, (B2, F2), jnp.float32)
    params2 = init_params(k_p2, F2, C2)

    out2 = jax.block_until_ready(asl_model_forward(x2, params2))
    assert out2.shape == (B2, C2)
    assert jnp.allclose(out2, reference_forward_bf16_fused(x2, params2), atol=1e-2, rtol=1e-2)
    assert jnp.allclose(out2, reference_forward_f32(x2, params2), atol=3e-2, rtol=3e-2)

    print("KERNEL_OK")
</pallas_src>

<mosaic_0001>
module attributes {stable_mosaic.version = 11 : i64} {
  func.func @asl_fused_kernel(%arg0: i32, %arg1: memref<16x128xbf16, #tpu.memory_space<vmem>>, %arg2: memref<128x128xbf16, #tpu.memory_space<vmem>>, %arg3: memref<1x128xf32, #tpu.memory_space<vmem>>, %arg4: memref<16x128xf32, #tpu.memory_space<vmem>>) attributes {dimension_semantics = [#tpu.dimension_semantics<parallel>], iteration_bounds = array<i64: 1>, scalar_prefetch = 0 : i64, scratch_operands = 0 : i64, tpu.core_type = #tpu.core_type<tc>, window_params = [{transform_indices = @transform_0, window_bounds = array<i64: 16, 128>}, {pipeline_mode = #tpu.pipeline_mode<synchronous>, transform_indices = @transform_1, window_bounds = array<i64: 128, 128>}, {pipeline_mode = #tpu.pipeline_mode<synchronous>, transform_indices = @transform_2, window_bounds = array<i64: 1, 128>}, {transform_indices = @transform_3, window_bounds = array<i64: 16, 128>}]} {
    %c0 = arith.constant 0 : index
    %c0_0 = arith.constant 0 : index
    %0 = vector.load %arg1[%c0, %c0_0] : memref<16x128xbf16, #tpu.memory_space<vmem>>, vector<16x128xbf16>
    %c0_1 = arith.constant 0 : index
    %c0_2 = arith.constant 0 : index
    %1 = vector.load %arg2[%c0_1, %c0_2] : memref<128x128xbf16, #tpu.memory_space<vmem>>, vector<128x128xbf16>
    %cst = arith.constant dense<0.000000e+00> : vector<16x128xf32>
    %2 = tpu.matmul %0, %1, %cst {dimension_numbers = #tpu.dot_dimension_numbers<[1], [0], [0], [1], [0, 0, 1, 1], [], []>} : vector<16x128xbf16>, vector<128x128xbf16>, vector<16x128xf32> -> vector<16x128xf32>
    %c0_3 = arith.constant 0 : index
    %c0_4 = arith.constant 0 : index
    %3 = vector.load %arg3[%c0_3, %c0_4] : memref<1x128xf32, #tpu.memory_space<vmem>>, vector<1x128xf32>
    %4 = vector.broadcast %3 : vector<1x128xf32> to vector<16x128xf32>
    %5 = arith.addf %2, %4 : vector<16x128xf32>
    %c0_5 = arith.constant 0 : index
    %c0_6 = arith.constant 0 : index
    %6 = vector.load %arg4[%c0_5, %c0_6] : memref<16x128xf32, #tpu.memory_space<vmem>>, vector<16x128xf32>
    tpu.vector_store %arg4[%c0_5, %c0_6], %5 {strides = array<i32>} : memref<16x128xf32, #tpu.memory_space<vmem>>, vector<16x128xf32>,
    return
  }
  func.func @transform_0(%arg0: i32) -> (i32, i32) {
    %c0_i32 = arith.constant 0 : i32
    %c0_i32_0 = arith.constant 0 : i32
    return %arg0, %c0_i32 : i32, i32
  }
  func.func @transform_1(%arg0: i32) -> (i32, i32) {
    %c0_i32 = arith.constant 0 : i32
    %c0_i32_0 = arith.constant 0 : i32
    %c0_i32_1 = arith.constant 0 : i32
    return %c0_i32, %c0_i32_0 : i32, i32
  }
  func.func @transform_2(%arg0: i32) -> (i32, i32) {
    %c0_i32 = arith.constant 0 : i32
    %c0_i32_0 = arith.constant 0 : i32
    %c0_i32_1 = arith.constant 0 : i32
    return %c0_i32, %c0_i32_0 : i32, i32
  }
  func.func @transform_3(%arg0: i32) -> (i32, i32) {
    %c0_i32 = arith.constant 0 : i32
    %c0_i32_0 = arith.constant 0 : i32
    return %arg0, %c0_i32 : i32, i32
  }
}

</mosaic_0001>

<bundles_post_ra>
// kernel: tpu_custom_call.1
= control target key start
LH: loop header
LB: loop body
LE: loop exit
PB: predicated region body
PF: predicated region fallthrough
CT: control target
= control target key end

     0   :  { %8 = vsyncpa [#allocation3], 0  ;;  %s329_s0 = inlined_call_operand.hbm [shape: bf16[16,128], index: 0, kind: input, shape index: {}]   ;;  %s330_s1 = inlined_call_operand.hbm [shape: bf16[128,128], index: 1, kind: input, shape index: {}]   ;;  %s331_s2 = inlined_call_operand.vmem [shape: f32[1,128], index: 2, kind: input, shape index: {}]   ;;  %s332_s3 = inlined_call_operand.hbm [shape: f32[16,128], index: 3, kind: output, shape index: {}]  }
   0x1   :  { %9 = vsyncpa [#allocation6], 0 }
   0x2   :  { %10 = vsyncpa [#allocation4], 0  ;;  %s15_s14 = sshll.u32 %s329_s0, 4  ;;  %s290_s15 = smov [#allocation2]   ;;  %s16_s14 = int_to_ptr.hbm [resolvable:$true] %s15_s14 }
   0x3   :  { %s17_s16 = sshll.u32 %s290_s15, 4  ;;  %s28_s19 = sshll.u32 %s330_s1, 4  ;;  %s18_s16 = int_to_ptr.vmem [resolvable:$true] %s17_s16  ;;  %s29_s19 = int_to_ptr.hbm [resolvable:$true] %s28_s19 }
   0x4   :  { %s291_s20 = smov 64   ;;  %s292_s21 = smov 4  }
   0x5   :  { %23 = dma.hbm_to_vmem [thread:$0]  %s16_s14, 128, %s18_s16, [#allocation3], %s291_s20, %s291_s20, %s292_s21  }
   0x6   :  { %s293_s22 = smov [#allocation5]  }
   0x7   :  { %s30_s23 = sshll.u32 %s293_s22, 4  ;;  %s31_s23 = int_to_ptr.vmem [resolvable:$true] %s30_s23 }
   0x8   :  { %36 = dma.hbm_to_vmem [thread:$0]  %s29_s19, 1024, %s31_s23, [#allocation6], %s291_s20, %s291_s20, %s292_s21  }
   0x9   :  { %284 = dma.done.wait [#allocation3], 128  }
   0xa   :  { %285 = vsyncadd [#allocation3], 4294967168 }
   0xb   :  { %286 = dma.done.wait [#allocation6], 1024  }
   0xc   :  { %287 = vsyncadd [#allocation6], 4294966272  ;;  %v203_v0 = vld [vmem:[#allocation5 + $0x38] sm:$0xff]  ;;  %v202_v1 = vld [vmem:[#allocation5 + $0x30] sm:$0xff]  ;;  %s294_s24 = smov [#allocation7]   ;;  %s145_s28 = sshll.u32 %s332_s3, 4  ;;  %s146_s28 = int_to_ptr.hbm [resolvable:$true] %s145_s28 }
   0xd   :  { %123 = vmatpush.bf16.msra.mxu0 %v203_v0  ;;  %v201_v2 = vld [vmem:[#allocation5 + $0x28] sm:$0xff]  ;;  %v200_v3 = vld [vmem:[#allocation5 + $0x20] sm:$0xff]  ;;  %v199_v4 = vld [vmem:[#allocation5 + $0x18] sm:$0xff]  ;;  %s143_s25 = sshll.u32 %s294_s24, 4  ;;  %s295_s29 = smov 128   ;;  %s144_s25 = int_to_ptr.vmem [resolvable:$true] %s143_s25 }
   0xe   :  { %v198_v5 = vld [vmem:[#allocation5 + $0x10] sm:$0xff]  ;;  %v197_v6 = vld [vmem:[#allocation5 + $0x8] sm:$0xff]  ;;  %v196_v7 = vld [vmem:[#allocation5] sm:$0xff]  ;;  %s296_s30 = smov 8  }
   0xf   :  { %v195_v8 = vld [vmem:[#allocation2] sm:$0xff] }
  0x10   :  { %v211_v9 = vld [vmem:[%s331_s2] ss:$0 sm:$0xff] }
  0x11   :  { %124 = vmatpush.bf16.msra.mxu0 %v202_v1 }
  0x15   :  { %125 = vmatpush.bf16.msra.mxu0 %v201_v2 }
  0x19   :  { %126 = vmatpush.bf16.msra.mxu0 %v200_v3 }
  0x1d   :  { %127 = vmatpush.bf16.msra.mxu0 %v199_v4 }
  0x21   :  { %128 = vmatpush.bf16.msra.mxu0 %v198_v5 }
  0x25   :  { %129 = vmatpush.bf16.msra.mxu0 %v197_v6 }
  0x29   :  { %130 = vmatpush.bf16.msra.mxu0 %v196_v7 }
  0x2c   :  { %131 = vmatmul.bf16.vlgmr.msra.gmra.mxu0 %v195_v8 }
  0xa9   :  { %v132_v10 = vpop.f32.mrf.mxu0 }
  0xaa   :  { %v133_v11 = vadd.f32 %v211_v9, %v132_v10 }
  0xac   :  { %137 = vst [vmem:[#allocation7] sm:$0xff] %v133_v11 }
  0xb1   :  { %v134_v12 = vpop.f32.mrf.mxu0 }
  0xb2   :  { %v135_v13 = vadd.f32 %v211_v9, %v134_v12 }
  0xb4   :  { %138 = vst [vmem:[#allocation7 + $0x8] sm:$0xff] %v135_v13 }
  0xb5   :  { %151 = dma.vmem_to_hbm [thread:$0]  %s144_s25, 256, %s146_s28, [#allocation4], %s295_s29, %s295_s29, %s296_s30  }
  0xb6   :  { %288 = dma.done.wait [#allocation4], 256  }
  0xb7   :  { %289 = vsyncadd [#allocation4], 4294967040 }
  0xb8   :  { %156 = vsyncpa [#allocation3], 1 }
  0xb9   :  { %157 = vsyncpa [#allocation6], 1 }
  0xba   :  { %158 = vsyncpa [#allocation4], 1 }

</bundles_post_ra>
